<compile_context>
chip_gen: v5e
topology: v5e:2x2
jax: 0.10.0
libtpu: 0.0.40
codegen_flags: <defaults>
</compile_context>

<pallas_src>
import functools

import jax
import jax.numpy as jnp
import numpy as np
from jax import lax
from jax.experimental import pallas as pl
from jax.experimental.pallas import tpu as pltpu

LOG_SIG_MIN_VALUES = -5.0
LOG_STD_MAX_VALUES = 2.0


def _obs_model_kernel(x_ref, w1_ref, w2_ref, wh_ref, btr_ref, bh_ref, out_ref,
                      *, n_mean_cols):
    """One batch tile of the whole (block-diagonalized) ensemble forward."""
    f32 = jnp.float32
    cdt = w1_ref.dtype                                   # MXU operand dtype (bf16)

    x = x_ref[...].astype(cdt)                           # [TB, Din]
    h = jnp.dot(x, w1_ref[...], preferred_element_type=f32) + btr_ref[0:1, :]
    h = jnp.maximum(h, 0.0)                              # [TB, E*H]
    h = jnp.dot(h.astype(cdt), w2_ref[...], preferred_element_type=f32) + btr_ref[1:2, :]
    h = jnp.maximum(h, 0.0)                              # [TB, E*H]
    out = jnp.dot(h.astype(cdt), wh_ref[...], preferred_element_type=f32) + bh_ref[...]
    # Columns [0, n_mean_cols) are the packed means; the rest are pre-clip log_stds.
    col = lax.broadcasted_iota(jnp.int32, out.shape, 1)
    clipped = jnp.clip(out, LOG_SIG_MIN_VALUES, LOG_STD_MAX_VALUES)
    out = jnp.where(col >= n_mean_cols, clipped, out)
    out_ref[...] = out.astype(out_ref.dtype)             # [TB, 2*E*Dout] lane-dense packed


def prepare_packed_params(params, *, compute_dtype=jnp.bfloat16):
    """One-time offline weight prep: fold the static masks into the weights, pack the
    ensemble into (block-diagonal) matrices, and cast the MXU operands to bf16."""
    w1, w2 = params['w1'], params['w2']                  # [E,Din,H], [E,H,H]
    btr = params['b_trunk']                              # [E,2,H]
    wh, bh = params['w_head'], params['b_head']          # [E,2,H,Dout], [E,2,Dout]
    in_mask = params['in_mask'][:, 0, :]                 # [E, Din]
    out_mask = params['out_mask'][:, 0, :]               # [E, Dout]

    E, Din, H = w1.shape
    Dout = wh.shape[-1]
    EH, OC = E * H, 2 * E * Dout

    # Fold the input mask into layer-1 rows: dot(x*m, W) == dot(x, W * m[:, None]).
    w1m = w1 * in_mask[:, :, None]                                   # [E, Din, H]
    w1_packed = jnp.transpose(w1m, (1, 0, 2)).reshape(Din, EH)       # [Din, E*H]

    # Block-diagonal trunk layer 2.
    w2_bd = jnp.zeros((EH, EH), jnp.float32)
    for e in range(E):
        w2_bd = w2_bd.at[e * H:(e + 1) * H, e * H:(e + 1) * H].set(w2[e])

    # Fused mean||log_std head, block-diagonal, output mask folded into columns.
    whm = wh * out_mask[:, None, None, :]                            # [E, 2, H, Dout]
    w_head_bd = jnp.zeros((EH, OC), jnp.float32)
    for e in range(E):
        w_head_bd = w_head_bd.at[e * H:(e + 1) * H,
                                 e * Dout:(e + 1) * Dout].set(whm[e, 0])
        w_head_bd = w_head_bd.at[e * H:(e + 1) * H,
                                 E * Dout + e * Dout:E * Dout + (e + 1) * Dout].set(whm[e, 1])

    b_trunk_packed = jnp.transpose(btr, (1, 0, 2)).reshape(2, EH)    # [2, E*H]
    bhm = bh * out_mask[:, None, :]                                  # [E, 2, Dout]
    b_head_packed = jnp.concatenate(
        [bhm[:, 0].reshape(-1), bhm[:, 1].reshape(-1)]).reshape(1, OC)

    return {
        'w1_packed': w1_packed.astype(compute_dtype),
        'w2_bd': w2_bd.astype(compute_dtype),
        'w_head_bd': w_head_bd.astype(compute_dtype),
        'b_trunk_packed': b_trunk_packed.astype(jnp.float32),
        'b_head_packed': b_head_packed.astype(jnp.float32),
        'ensemble': E, 'hidden': H, 'out_dim': Dout,
    }


def observation_model_forward(inputs, d, packed, *, batch_block=512):
    """inputs: [B, 2*state+action+reward], d: [B, q_dim] -> (mean, log_std): [E, B, Dout] each."""
    x = jnp.concatenate([inputs, d], axis=-1).astype(jnp.float32)    # [B, Din]
    w1p, w2bd, whbd = packed['w1_packed'], packed['w2_bd'], packed['w_head_bd']
    btr, bhp = packed['b_trunk_packed'], packed['b_head_packed']
    E, H, Dout = packed['ensemble'], packed['hidden'], packed['out_dim']

    B, Din = x.shape
    EH, OC = E * H, 2 * E * Dout

    # Batch-tiled grid ("parallel"): balanced across v7x's 2 TensorCores, single step on v5e/v6e.
    if B <= batch_block:
        tb, b_pad = B, B                                 # single full-extent block
    else:
        tb = batch_block                                 # multiple of 8 by construction
        b_pad = pl.cdiv(B, tb) * tb
        if b_pad != B:
            x = jnp.pad(x, ((0, b_pad - B), (0, 0)))
    grid = (b_pad // tb,)

    const = lambda b: (0, 0)
    kernel = functools.partial(_obs_model_kernel, n_mean_cols=E * Dout)

    packed_out = pl.pallas_call(
        kernel,
        grid=grid,
        in_specs=[
            pl.BlockSpec((tb, Din), lambda b: (b, 0)),   # shared activations (batch tile)
            pl.BlockSpec((Din, EH), const),              # layer-1 weight (input mask folded)
            pl.BlockSpec((EH, EH), const),               # layer-2 weight (block-diagonal)
            pl.BlockSpec((EH, OC), const),               # mean||log_std heads (block-diag, mask folded)
            pl.BlockSpec((2, EH), const),                # trunk biases (packed)
            pl.BlockSpec((1, OC), const),                # head biases (packed, mask folded)
        ],
        out_specs=pl.BlockSpec((tb, OC), lambda b: (b, 0)),
        out_shape=jax.ShapeDtypeStruct((b_pad, OC), jnp.float32),
        compiler_params=pltpu.CompilerParams(dimension_semantics=("parallel",)),
    )(x, w1p, w2bd, whbd, btr, bhp)

    packed_out = packed_out[:B]                          # drop batch padding (if any)
    out4 = packed_out.reshape(B, 2, E, Dout)             # free layout plumbing in the wrapper
    mean = jnp.transpose(out4[:, 0], (1, 0, 2))          # [E, B, Dout]
    log_std = jnp.transpose(out4[:, 1], (1, 0, 2))       # [E, B, Dout]
    return mean, log_std


def _build_masks(state_dim, action_dim, reward_dim, q_dim, num_model):
    """Replicates ObservationModel._init_mask_matrix (masks as 0/1 float32)."""
    nm3 = num_model // 3
    masked_in_dim = state_dim * 2 + action_dim + reward_dim
    out_dim = state_dim + action_dim + reward_dim

    in_mask = np.ones((num_model, masked_in_dim), np.float32)
    in_idx = ([[0, state_dim]] * nm3
              + [[state_dim, state_dim + action_dim]] * nm3
              + [[state_dim * 2 + action_dim, masked_in_dim]] * nm3)
    for i, (a, b) in enumerate(in_idx):
        in_mask[i, a:b] = 0.0

    out_mask = np.zeros((num_model, out_dim), np.float32)
    out_idx = ([[0, state_dim]] * nm3
               + [[state_dim, state_dim + action_dim]] * nm3
               + [[state_dim + action_dim, out_dim]] * nm3)
    for i, (a, b) in enumerate(out_idx):
        out_mask[i, a:b] = 1.0

    # d is concatenated after the masked inputs and is never masked -> extend with ones.
    full_in_mask = np.concatenate(
        [in_mask, np.ones((num_model, q_dim), np.float32)], axis=-1)
    return (jnp.asarray(full_in_mask)[:, None, :],       # [E, 1, Din]
            jnp.asarray(out_mask)[:, None, :])           # [E, 1, Dout]


def _init_params(key, E, Din, H, Dout):
    ks = jax.random.split(key, 5)
    n = lambda k, shp, s: (s * jax.random.normal(k, shp)).astype(jnp.float32)
    return {
        'w1': n(ks[0], (E, Din, H), 0.2),
        'w2': n(ks[1], (E, H, H), 0.2),
        'b_trunk': n(ks[2], (E, 2, H), 0.1),          # [.,0]=layer1 bias, [.,1]=layer2 bias
        'w_head': n(ks[3], (E, 2, H, Dout), 0.2),     # [.,0]=mean weight, [.,1]=log_std weight
        'b_head': n(ks[4], (E, 2, Dout), 0.1),        # [.,0]=mean bias,   [.,1]=log_std bias
    }


def _reference(inputs, d, params):
    """Pure-JAX f32 reference mirroring ObservationModel.forward exactly."""
    relu = lambda v: jnp.maximum(v, 0.0)
    in_mask = params['in_mask'][:, 0, :]               # [E, Din]
    out_mask = params['out_mask'][:, 0, :]             # [E, Dout]
    x = jnp.concatenate([inputs, d], axis=-1)          # [B, Din]
    obs = x[None, :, :] * in_mask[:, None, :]          # [E, B, Din]
    h = relu(jnp.einsum('ebi,eih->ebh', obs, params['w1']) + params['b_trunk'][:, None, 0])
    h = relu(jnp.einsum('ebh,ehk->ebk', h, params['w2']) + params['b_trunk'][:, None, 1])
    mean = jnp.einsum('ebh,eho->ebo', h, params['w_head'][:, 0]) + params['b_head'][:, None, 0]
    log_std = jnp.einsum('ebh,eho->ebo', h, params['w_head'][:, 1]) + params['b_head'][:, None, 1]
    log_std = jnp.clip(log_std, LOG_SIG_MIN_VALUES, LOG_STD_MAX_VALUES)
    return mean * out_mask[:, None, :], log_std * out_mask[:, None, :]


def _reference_emulated(inputs, d, params, compute_dtype):
    """Mirrors the kernel math exactly: masks folded into weights, MXU operands rounded to
    compute_dtype, f32 accumulation and f32 epilogue. Used for a tight structural check."""
    f32 = jnp.float32
    dn = lambda a: a.astype(compute_dtype).astype(f32)   # round-trip through MXU operand dtype
    relu = lambda v: jnp.maximum(v, 0.0)
    in_mask = params['in_mask'][:, 0, :]
    out_mask = params['out_mask'][:, 0, :]
    x = jnp.concatenate([inputs, d], axis=-1).astype(f32)

    w1m = dn(params['w1'] * in_mask[:, :, None])
    w2 = dn(params['w2'])
    whm = dn(params['w_head'] * out_mask[:, None, None, :])
    bh_mean = (params['b_head'][:, 0] * out_mask)[:, None, :]
    bh_lstd = (params['b_head'][:, 1] * out_mask)[:, None, :]

    h = relu(jnp.einsum('bi,eih->ebh', dn(x), w1m) + params['b_trunk'][:, None, 0])
    h = relu(jnp.einsum('ebh,ehk->ebk', dn(h), w2) + params['b_trunk'][:, None, 1])
    hc = dn(h)
    mean = jnp.einsum('ebh,eho->ebo', hc, whm[:, 0]) + bh_mean
    log_std = jnp.einsum('ebh,eho->ebo', hc, whm[:, 1]) + bh_lstd
    log_std = jnp.clip(log_std, LOG_SIG_MIN_VALUES, LOG_STD_MAX_VALUES)
    return mean, log_std


if __name__ == "__main__":
    # Small config consistent with the module defaults (l=2, gaussian, mlp std).
    # num_model must be a multiple of 3 for the mask construction.
    state_dim, action_dim, reward_dim, q_dim = 4, 2, 1, 2
    hidden_dim, num_model, batch = 32, 3, 8
    masked_in_dim = state_dim * 2 + action_dim + reward_dim        # 11
    input_dim = masked_in_dim + q_dim                              # 13
    output_dim = state_dim + action_dim + reward_dim               # 7

    key = jax.random.PRNGKey(0)
    k_in, k_d, k_par = jax.random.split(key, 3)
    inputs = jax.random.normal(k_in, (batch, masked_in_dim), dtype=jnp.float32)
    d = jax.random.normal(k_d, (batch, q_dim), dtype=jnp.float32)

    params = _init_params(k_par, num_model, input_dim, hidden_dim, output_dim)
    in_mask, out_mask = _build_masks(state_dim, action_dim, reward_dim, q_dim, num_model)
    params['in_mask'] = in_mask
    params['out_mask'] = out_mask

    # One-time offline weight prep (mask folding + block-diag packing + bf16 cast).
    packed = prepare_packed_params(params, compute_dtype=jnp.bfloat16)

    mean, log_std = jax.block_until_ready(observation_model_forward(inputs, d, packed))

    assert mean.shape == (num_model, batch, output_dim), mean.shape
    assert log_std.shape == (num_model, batch, output_dim), log_std.shape

    # Tight structural check against a reference that mirrors the kernel's bf16-operand /
    # f32-accumulate math exactly (verifies mask folding, block-diag packing, output packing).
    em_mean, em_log_std = jax.block_until_ready(
        _reference_emulated(inputs, d, params, jnp.bfloat16))
    np.testing.assert_allclose(np.asarray(mean), np.asarray(em_mean), rtol=1e-3, atol=1e-3)
    np.testing.assert_allclose(np.asarray(log_std), np.asarray(em_log_std), rtol=1e-3, atol=1e-3)

    # Semantics check against the pure-f32 module reference (loose tol for bf16 MXU operands).
    ref_mean, ref_log_std = jax.block_until_ready(_reference(inputs, d, params))
    np.testing.assert_allclose(np.asarray(mean), np.asarray(ref_mean), rtol=5e-2, atol=5e-2)
    np.testing.assert_allclose(np.asarray(log_std), np.asarray(ref_log_std), rtol=5e-2, atol=5e-2)

    print("KERNEL_OK")
</pallas_src>

<mosaic_0001>
module attributes {stable_mosaic.version = 11 : i64} {
  func.func @_obs_model_kernel(%arg0: i32, %arg1: memref<8x13xf32, #tpu.memory_space<vmem>>, %arg2: memref<13x96xbf16, #tpu.memory_space<vmem>>, %arg3: memref<96x96xbf16, #tpu.memory_space<vmem>>, %arg4: memref<96x42xbf16, #tpu.memory_space<vmem>>, %arg5: memref<2x96xf32, #tpu.memory_space<vmem>>, %arg6: memref<1x42xf32, #tpu.memory_space<vmem>>, %arg7: memref<8x42xf32, #tpu.memory_space<vmem>>) attributes {dimension_semantics = [#tpu.dimension_semantics<parallel>], iteration_bounds = array<i64: 1>, scalar_prefetch = 0 : i64, scratch_operands = 0 : i64, tpu.core_type = #tpu.core_type<tc>, window_params = [{transform_indices = @transform_0, window_bounds = array<i64: 8, 13>}, {pipeline_mode = #tpu.pipeline_mode<synchronous>, transform_indices = @transform_1, window_bounds = array<i64: 13, 96>}, {pipeline_mode = #tpu.pipeline_mode<synchronous>, transform_indices = @transform_2, window_bounds = array<i64: 96, 96>}, {pipeline_mode = #tpu.pipeline_mode<synchronous>, transform_indices = @transform_3, window_bounds = array<i64: 96, 42>}, {pipeline_mode = #tpu.pipeline_mode<synchronous>, transform_indices = @transform_4, window_bounds = array<i64: 2, 96>}, {pipeline_mode = #tpu.pipeline_mode<synchronous>, transform_indices = @transform_5, window_bounds = array<i64: 1, 42>}, {transform_indices = @transform_6, window_bounds = array<i64: 8, 42>}]} {
    %c0 = arith.constant 0 : index
    %c0_0 = arith.constant 0 : index
    %0 = vector.load %arg1[%c0, %c0_0] : memref<8x13xf32, #tpu.memory_space<vmem>>, vector<8x13xf32>
    %1 = arith.truncf %0 : vector<8x13xf32> to vector<8x13xbf16>
    %c0_1 = arith.constant 0 : index
    %c0_2 = arith.constant 0 : index
    %2 = vector.load %arg2[%c0_1, %c0_2] : memref<13x96xbf16, #tpu.memory_space<vmem>>, vector<13x96xbf16>
    %cst = arith.constant dense<0.000000e+00> : vector<8x96xf32>
    %3 = tpu.matmul %1, %2, %cst {dimension_numbers = #tpu.dot_dimension_numbers<[1], [0], [0], [1], [0, 0, 1, 1], [], []>} : vector<8x13xbf16>, vector<13x96xbf16>, vector<8x96xf32> -> vector<8x96xf32>
    %c0_3 = arith.constant 0 : index
    %c0_4 = arith.constant 0 : index
    %4 = vector.load %arg5[%c0_3, %c0_4] : memref<2x96xf32, #tpu.memory_space<vmem>>, vector<1x96xf32>
    %5 = vector.broadcast %4 : vector<1x96xf32> to vector<8x96xf32>
    %6 = arith.addf %3, %5 : vector<8x96xf32>
    %cst_5 = arith.constant 0.000000e+00 : f32
    %7 = vector.broadcast %cst_5 : f32 to vector<8x96xf32>
    %8 = arith.maximumf %6, %7 : vector<8x96xf32>
    %9 = arith.truncf %8 : vector<8x96xf32> to vector<8x96xbf16>
    %c0_6 = arith.constant 0 : index
    %c0_7 = arith.constant 0 : index
    %10 = vector.load %arg3[%c0_6, %c0_7] : memref<96x96xbf16, #tpu.memory_space<vmem>>, vector<96x96xbf16>
    %cst_8 = arith.constant dense<0.000000e+00> : vector<8x96xf32>
    %11 = tpu.matmul %9, %10, %cst_8 {dimension_numbers = #tpu.dot_dimension_numbers<[1], [0], [0], [1], [0, 0, 1, 1], [], []>} : vector<8x96xbf16>, vector<96x96xbf16>, vector<8x96xf32> -> vector<8x96xf32>
    %c1 = arith.constant 1 : index
    %c0_9 = arith.constant 0 : index
    %12 = vector.load %arg5[%c1, %c0_9] : memref<2x96xf32, #tpu.memory_space<vmem>>, vector<1x96xf32>
    %13 = vector.broadcast %12 : vector<1x96xf32> to vector<8x96xf32>
    %14 = arith.addf %11, %13 : vector<8x96xf32>
    %cst_10 = arith.constant 0.000000e+00 : f32
    %15 = vector.broadcast %cst_10 : f32 to vector<8x96xf32>
    %16 = arith.maximumf %14, %15 : vector<8x96xf32>
    %17 = arith.truncf %16 : vector<8x96xf32> to vector<8x96xbf16>
    %c0_11 = arith.constant 0 : index
    %c0_12 = arith.constant 0 : index
    %18 = vector.load %arg4[%c0_11, %c0_12] : memref<96x42xbf16, #tpu.memory_space<vmem>>, vector<96x42xbf16>
    %cst_13 = arith.constant dense<0.000000e+00> : vector<8x42xf32>
    %19 = tpu.matmul %17, %18, %cst_13 {dimension_numbers = #tpu.dot_dimension_numbers<[1], [0], [0], [1], [0, 0, 1, 1], [], []>} : vector<8x96xbf16>, vector<96x42xbf16>, vector<8x42xf32> -> vector<8x42xf32>
    %c0_14 = arith.constant 0 : index
    %c0_15 = arith.constant 0 : index
    %20 = vector.load %arg6[%c0_14, %c0_15] : memref<1x42xf32, #tpu.memory_space<vmem>>, vector<1x42xf32>
    %21 = vector.broadcast %20 : vector<1x42xf32> to vector<8x42xf32>
    %22 = arith.addf %19, %21 : vector<8x42xf32>
    %23 = tpu.iota {dimensions = array<i32: 1>} : vector<8x42xi32>
    %cst_16 = arith.constant -5.000000e+00 : f32
    %cst_17 = arith.constant 2.000000e+00 : f32
    %24 = vector.broadcast %cst_16 : f32 to vector<8x42xf32>
    %25 = arith.maximumf %24, %22 : vector<8x42xf32>
    %26 = vector.broadcast %cst_17 : f32 to vector<8x42xf32>
    %27 = arith.minimumf %26, %25 : vector<8x42xf32>
    %c21_i32 = arith.constant 21 : i32
    %28 = vector.broadcast %c21_i32 : i32 to vector<8x42xi32>
    %29 = arith.cmpi sge, %23, %28 : vector<8x42xi32>
    %30 = arith.select %29, %27, %22 : vector<8x42xi1>, vector<8x42xf32>
    %c0_18 = arith.constant 0 : index
    %c0_19 = arith.constant 0 : index
    %31 = vector.load %arg7[%c0_18, %c0_19] : memref<8x42xf32, #tpu.memory_space<vmem>>, vector<8x42xf32>
    tpu.vector_store %arg7[%c0_18, %c0_19], %30 {strides = array<i32>} : memref<8x42xf32, #tpu.memory_space<vmem>>, vector<8x42xf32>,
    return
  }
  func.func @transform_0(%arg0: i32) -> (i32, i32) {
    %c0_i32 = arith.constant 0 : i32
    %c0_i32_0 = arith.constant 0 : i32
    return %arg0, %c0_i32 : i32, i32
  }
  func.func @transform_1(%arg0: i32) -> (i32, i32) {
    %c0_i32 = arith.constant 0 : i32
    %c0_i32_0 = arith.constant 0 : i32
    %c0_i32_1 = arith.constant 0 : i32
    return %c0_i32, %c0_i32_0 : i32, i32
  }
  func.func @transform_2(%arg0: i32) -> (i32, i32) {
    %c0_i32 = arith.constant 0 : i32
    %c0_i32_0 = arith.constant 0 : i32
    %c0_i32_1 = arith.constant 0 : i32
    return %c0_i32, %c0_i32_0 : i32, i32
  }
  func.func @transform_3(%arg0: i32) -> (i32, i32) {
    %c0_i32 = arith.constant 0 : i32
    %c0_i32_0 = arith.constant 0 : i32
    %c0_i32_1 = arith.constant 0 : i32
    return %c0_i32, %c0_i32_0 : i32, i32
  }
  func.func @transform_4(%arg0: i32) -> (i32, i32) {
    %c0_i32 = arith.constant 0 : i32
    %c0_i32_0 = arith.constant 0 : i32
    %c0_i32_1 = arith.constant 0 : i32
    return %c0_i32, %c0_i32_0 : i32, i32
  }
  func.func @transform_5(%arg0: i32) -> (i32, i32) {
    %c0_i32 = arith.constant 0 : i32
    %c0_i32_0 = arith.constant 0 : i32
    %c0_i32_1 = arith.constant 0 : i32
    return %c0_i32, %c0_i32_0 : i32, i32
  }
  func.func @transform_6(%arg0: i32) -> (i32, i32) {
    %c0_i32 = arith.constant 0 : i32
    %c0_i32_0 = arith.constant 0 : i32
    return %arg0, %c0_i32 : i32, i32
  }
}

</mosaic_0001>

<bundles_post_ra>
// kernel: tpu_custom_call.1
= control target key start
LH: loop header
LB: loop body
LE: loop exit
PB: predicated region body
PF: predicated region fallthrough
CT: control target
= control target key end

     0   :  { %vm40_vm0 = vcmask 1045504   ;;  %vm41_vm1 = vcmask 1046528   ;;  %v322_v4 = vmov 65535   ;;  %s416_s0 = inlined_call_operand.vmem [shape: f32[8,13], index: 0, kind: input, shape index: {}]   ;;  %s417_s1 = inlined_call_operand.vmem [shape: bf16[13,96], index: 1, kind: input, shape index: {}]   ;;  %s418_s2 = inlined_call_operand.vmem [shape: bf16[96,96], index: 2, kind: input, shape index: {}]   ;;  %s419_s3 = inlined_call_operand.vmem [shape: bf16[96,42], index: 3, kind: input, shape index: {}]   ;;  %s420_s4 = inlined_call_operand.vmem [shape: f32[2,96], index: 4, kind: input, shape index: {}]   ;;  %s421_s5 = inlined_call_operand.vmem [shape: f32[1,42], index: 5, kind: input, shape index: {}]   ;;  %s422_s6 = inlined_call_operand.hbm [shape: f32[8,42], index: 6, kind: output, shape index: {}]  }
   0x1   :  { %v225_v0 = vld [vmem:[%s417_s1] sm:$0xf]  ;;  %v278_v1 = vld [vmem:[%s417_s1] sm:$0x70]  ;;  %v284_v3 = vld [vmem:[%s418_s2 + $0x28] sm:$0xff]  ;;  %v42_v5 = vsel %vm40_vm0, 4294967295, %v322_v4 }
   0x2   :  { %v226_v2 = vor.u32 %v278_v1, %v225_v0  ;;  %v25_v6 = vld [vmem:[%s416_s0] sm:$0xff]  ;;  %v43_v7 = vsel %vm41_vm1, %v42_v5, 0  ;;  %118 = vmatpush.bf16.msra.mxu1 %v284_v3 }
   0x3   :  { %v283_v8 = vld [vmem:[%s418_s2 + $0x20] sm:$0xff] }
   0x4   :  { %v45_v9 = vand.u32 %v226_v2, %v43_v7 }
   0x5   :  { %11 = vsyncpa [#allocation3], 0  ;;  %v26_v10 = vpack.c.bf16 %v25_v6, %v25_v6  ;;  %vm36_vm2 = vcmask 105472   ;;  %v282_v11 = vld [vmem:[%s418_s2 + $0x18] sm:$0xff]  ;;  %v281_v12 = vld [vmem:[%s418_s2 + $0x10] sm:$0xff]  ;;  %vm112_vm3 = vcmask 785408   ;;  %v199_v33 = vlaneseq }
   0x6   :  { %54 = vmatpush.bf16.msra.mxu0 %v45_v9  ;;  %119 = vmatpush.bf16.msra.mxu1 %v283_v8  ;;  %v280_v13 = vld [vmem:[%s418_s2 + $0x8] sm:$0xff]  ;;  %v279_v14 = vld [vmem:[%s418_s2] sm:$0xff]  ;;  %v288_v17 = vld [vmem:[%s419_s3 + $0x18] sm:$0xff]  ;;  %vm205_vm5 = vcmask 343040  }
   0x7   :  { %v290_v15 = vld [vmem:[%s419_s3 + $0x28] sm:$0xff]  ;;  %v289_v16 = vld [vmem:[%s419_s3 + $0x20] sm:$0xff]  ;;  %v287_v18 = vld [vmem:[%s419_s3 + $0x10] sm:$0xff]  ;;  %v200_v36 = vand.u32 127, %v199_v33 }
   0x8   :  { %188 = vmatpush.bf16.msra.mxu2 %v290_v15  ;;  %v293_v19 = vld [vmem:[%s420_s4] ss:$0 sm:$0xff]  ;;  %v286_v25 = vld [vmem:[%s419_s3 + $0x8] sm:$0xff]  ;;  %v294_v27 = vld [vmem:[%s420_s4 + $0x1] ss:$0 sm:$0xff]  ;;  %s214_s4 = sshll.u32 %s422_s6, 4  ;;  %s215_s4 = int_to_ptr.hbm [resolvable:$true] %s214_s4 }
   0x9   :  { %227 = vmatmul.msk.bf16.vlgmr.msra.gmra.mxu0 %vm36_vm2, %v26_v10  ;;  %v285_v26 = vld [vmem:[%s419_s3] sm:$0xff]  ;;  %s323_s3 = smov [#allocation2]   ;;  %vm203_vm4 = vcmp.ge.s32.totalorder %v200_v36, 21 }
   0xa   :  { %120 = vmatpush.bf16.msra.mxu1 %v282_v11  ;;  %v295_v34 = vld [vmem:[%s421_s5] ss:$0 sm:$0xff]  ;;  %s212_s30 = sshll.u32 %s323_s3, 4  ;;  %s213_s30 = int_to_ptr.vmem [resolvable:$true] %s212_s30 }
   0xc   :  { %189 = vmatpush.bf16.msra.mxu2 %v289_v16 }
   0xe   :  { %121 = vmatpush.bf16.msra.mxu1 %v281_v12 }
  0x10   :  { %190 = vmatpush.bf16.msra.mxu2 %v288_v17 }
  0x12   :  { %122 = vmatpush.bf16.msra.mxu1 %v280_v13 }
  0x14   :  { %191 = vmatpush.bf16.msra.mxu2 %v287_v18 }
  0x16   :  { %123 = vmatpush.bf16.msra.mxu1 %v279_v14 }
  0x18   :  { %192 = vmatpush.bf16.msra.mxu2 %v286_v25 }
  0x1c   :  { %193 = vmatpush.bf16.msra.mxu2 %v285_v26 }
  0x86   :  { %v56_v20 = vpop.f32.mrf.mxu0 }
  0x87   :  { %v57_v21 = vadd.f32 %v293_v19, %v56_v20 }
  0x89   :  { %v60_v22 = vmax.f32 %v57_v21, 0.0 }
  0x8b   :  { %v61_v23 = vpack.c.bf16 %v60_v22, %v60_v22 }
  0x8d   :  { %252 = vmatmul.msk.bf16.vlgmr.msra.gmra.mxu1 %vm112_vm3, %v61_v23 }
  0x8e   :  { %v58_v24 = vpop.f32.mrf.mxu0 }
 0x10a   :  { %v125_v28 = vpop.f32.mrf.mxu1 }
 0x10b   :  { %v126_v29 = vadd.f32 %v294_v27, %v125_v28 }
 0x10d   :  { %v129_v30 = vmax.f32 %v126_v29, 0.0 }
 0x10f   :  { %v130_v31 = vpack.c.bf16 %v129_v30, %v129_v30 }
 0x111   :  { %277 = vmatmul.msk.bf16.vlgmr.msra.gmra.mxu2 %vm112_vm3, %v130_v31 }
 0x112   :  { %v127_v32 = vpop.f32.mrf.mxu1 }
 0x194   :  { %v195_v35 = vpop.f32.mrf.mxu2 }
 0x195   :  { %v196_v37 = vadd.f32 %v295_v34, %v195_v35 }
 0x197   :  { %v201_v38 = vmax.f32 %v196_v37, -5.0 }
 0x199   :  { %v202_v39 = vmin.f32 %v201_v38, 2.0 }
 0x19b   :  { %v204_v40 = vsel %vm203_vm4, %v202_v39, %v196_v37 }
 0x19c   :  { %v197_v41 = vpop.f32.mrf.mxu2  ;;  %206 = vst.msk [vmem:[#allocation2] sm:$0xff] %vm205_vm5, %v204_v40 }
 0x19d   :  { %217 = dma.vmem_to_hbm [thread:$0]  %s213_s30, 128, %s215_s4, [#allocation3]  }
 0x19e   :  { %320 = dma.done.wait [#allocation3], 128  }
 0x19f   :  { %321 = vsyncadd [#allocation3], 4294967168 }
 0x1a0   :  { %222 = vsyncpa [#allocation3], 1 }

</bundles_post_ra>
